<compile_context>
chip_gen: v5e
topology: v5e:2x2
jax: 0.10.0
libtpu: 0.0.40
codegen_flags: <defaults>
</compile_context>

<pallas_src>
import jax
import jax.numpy as jnp
from jax.experimental import pallas as pl
from jax.experimental.pallas import tpu as pltpu


# Tile sizes for the tiled (large-shape) path.  f32, double-buffered inputs:
#   2*(TM*TK + TK*TN)*4B + TM*TN*4B (acc) ~= 2.3 MiB  << 32 MiB scoped VMEM.
_TM, _TN, _TK = 256, 256, 512
_LANE = 128      # vreg lane width
_SUBLANE = 8     # vreg sublane count (f32)


def _round_up(x: int, m: int) -> int:
    return ((x + m - 1) // m) * m


# ----------------------------- kernels --------------------------------------


def _linear_single_block_kernel(x_ref, w_ref, b_ref, o_ref):
    # One MXU matmul + bias add on fully VMEM-resident, lane-padded operands.
    o_ref[...] = (
        jnp.dot(x_ref[...], w_ref[...], preferred_element_type=jnp.float32)
        + b_ref[...]
    ).astype(o_ref.dtype)


def _linear_tiled_kernel(x_ref, w_ref, b_ref, o_ref, acc_ref):
    k = pl.program_id(2)

    @pl.when(k == 0)
    def _init():
        acc_ref[...] = jnp.zeros_like(acc_ref)

    acc_ref[...] += jnp.dot(
        x_ref[...], w_ref[...], preferred_element_type=jnp.float32
    )

    @pl.when(k == pl.num_programs(2) - 1)
    def _finalize():
        o_ref[...] = (acc_ref[...] + b_ref[...]).astype(o_ref.dtype)


# ------------------------- pallas_call wrappers ------------------------------


def _linear_single_block(x_p, w_p, b_p):
    m, k = x_p.shape
    n = w_p.shape[1]
    return pl.pallas_call(
        _linear_single_block_kernel,
        out_shape=jax.ShapeDtypeStruct((m, n), x_p.dtype),
        # No grid / default whole-array VMEM blocks: zero pipeline bookkeeping.
        cost_estimate=pl.CostEstimate(
            flops=2 * m * k * n,
            transcendentals=0,
            bytes_accessed=4 * (m * k + k * n + n + m * n),
        ),
    )(x_p, w_p, b_p)


def _linear_tiled(x_p, w_p, b_p, *, tm=_TM, tn=_TN, tk=_TK, use_bf16_mxu=False):
    out_dtype = x_p.dtype
    if use_bf16_mxu:
        # v6e/v7x fast path: bf16 MXU inputs, f32 accumulation in scratch.
        x_p = x_p.astype(jnp.bfloat16)
        w_p = w_p.astype(jnp.bfloat16)

    m, k = x_p.shape
    n = w_p.shape[1]
    tm, tn, tk = min(tm, m), min(tn, n), min(tk, k)
    mp, np_, kp = _round_up(m, tm), _round_up(n, tn), _round_up(k, tk)
    if (mp, kp) != (m, k):
        x_p = jnp.pad(x_p, ((0, mp - m), (0, kp - k)))
    if (kp, np_) != (k, n):
        w_p = jnp.pad(w_p, ((0, kp - k), (0, np_ - n)))
    if np_ != n:
        b_p = jnp.pad(b_p, ((0, 0), (0, np_ - n)))

    grid = (mp // tm, np_ // tn, kp // tk)
    out = pl.pallas_call(
        _linear_tiled_kernel,
        out_shape=jax.ShapeDtypeStruct((mp, np_), out_dtype),
        grid_spec=pltpu.PrefetchScalarGridSpec(
            num_scalar_prefetch=0,
            grid=grid,
            in_specs=[
                pl.BlockSpec((tm, tk), lambda i, j, kk: (i, kk)),
                pl.BlockSpec((tk, tn), lambda i, j, kk: (kk, j)),
                pl.BlockSpec((1, tn), lambda i, j, kk: (0, j)),
            ],
            out_specs=pl.BlockSpec((tm, tn), lambda i, j, kk: (i, j)),
            scratch_shapes=[pltpu.VMEM((tm, tn), jnp.float32)],
        ),
        compiler_params=pltpu.CompilerParams(
            # M/N shard across TensorCores (v7x: 2 TC/chip); K accumulates.
            dimension_semantics=("parallel", "parallel", "arbitrary"),
            # Explicit budget, safe for v7x's 64 MiB physical VMEM.
            vmem_limit_bytes=32 * 1024 * 1024,
        ),
    )(x_p, w_p, b_p)
    return out[:m, :n]


# ----------------------------- public API ------------------------------------


def prepare_extractor_params(weight, bias):
    """One-time re-pack of nn.Linear params.

    weight: (D_out, D_in) torch layout -> zero-padded (round128(D_in),
            round128(D_out)) so the forward pass never transposes.
    bias:   (D_out,) -> (1, round128(D_out)).
    Call at model-build time, NOT per forward.
    """
    d_out, d_in = weight.shape
    k_pad = _round_up(d_in, _LANE)
    n_pad = _round_up(d_out, _LANE)
    w_packed = jnp.pad(
        jnp.transpose(weight), ((0, k_pad - d_in), (0, n_pad - d_out))
    )
    b_packed = jnp.pad(jnp.reshape(bias, (1, d_out)), ((0, 0), (0, n_pad - d_out)))
    return w_packed, b_packed


def extractor_forward(x, w_packed, b_packed, d_out, *, use_bf16_mxu=False):
    """y = x @ W^T + b   (matches torch Extractor.forward / nn.Linear).

    x:        (B, D_in)
    w_packed: (K_pad, N_pad) from prepare_extractor_params
    b_packed: (1, N_pad)
    d_out:    true output feature count (static int)
    """
    b_rows, d_in = x.shape
    k_pad, n_pad = w_packed.shape
    m_pad = _round_up(max(b_rows, _SUBLANE), _SUBLANE)
    x_p = jnp.pad(x, ((0, m_pad - b_rows), (0, k_pad - d_in)))

    # Single-tile problems skip the grid machinery entirely.
    if m_pad <= _TM and n_pad <= _TN and k_pad <= _TK:
        y_p = _linear_single_block(x_p, w_packed, b_packed)
    else:
        y_p = _linear_tiled(x_p, w_packed, b_packed, use_bf16_mxu=use_bf16_mxu)
    return y_p[:b_rows, :d_out]


if __name__ == "__main__":
    # ---- Extractor(dims=(32, 32)) at a small demo batch ---------------------
    dims = (32, 32)
    batch = 8

    key = jax.random.PRNGKey(0)
    k_x, k_w, k_x2, k_w2, k_b2 = jax.random.split(key, 5)

    # Parameter init mirroring the torch module:
    #   weight ~ Normal(0, 1/in_features), bias = 0
    weight = (1.0 / dims[0]) * jax.random.normal(
        k_w, (dims[1], dims[0]), dtype=jnp.float32
    )
    bias = jnp.zeros((dims[1],), dtype=jnp.float32)
    x = jax.random.normal(k_x, (batch, dims[0]), dtype=jnp.float32)

    w_packed, b_packed = prepare_extractor_params(weight, bias)  # one-time
    fwd = jax.jit(extractor_forward, static_argnums=(3,))

    y = jax.block_until_ready(fwd(x, w_packed, b_packed, dims[1]))
    y_ref = x @ weight.T + bias
    assert y.shape == (batch, dims[1])
    assert jnp.allclose(y, y_ref, atol=1e-5, rtol=1e-5), "small-path mismatch"

    # ---- Same kernel at a production-ish shape (exercises the tiled path) ---
    d_in2, d_out2, batch2 = 1024, 512, 512
    w2 = (1.0 / d_in2) * jax.random.normal(k_w2, (d_out2, d_in2), dtype=jnp.float32)
    b2 = 0.01 * jax.random.normal(k_b2, (d_out2,), dtype=jnp.float32)
    x2 = jax.random.normal(k_x2, (batch2, d_in2), dtype=jnp.float32)

    w2_packed, b2_packed = prepare_extractor_params(w2, b2)
    y2 = jax.block_until_ready(fwd(x2, w2_packed, b2_packed, d_out2))
    y2_ref = x2 @ w2.T + b2
    rel_err = jnp.max(jnp.abs(y2 - y2_ref)) / (jnp.max(jnp.abs(y2_ref)) + 1e-6)
    assert y2.shape == (batch2, d_out2)
    assert rel_err < 2e-2, f"tiled-path mismatch: rel_err={rel_err}"

    print("KERNEL_OK")
</pallas_src>

<mosaic_0001>
module attributes {stable_mosaic.version = 11 : i64} {
  func.func @_linear_single_block_kernel(%arg0: memref<8x128xf32, #tpu.memory_space<vmem>>, %arg1: memref<128x128xf32, #tpu.memory_space<vmem>>, %arg2: memref<1x128xf32, #tpu.memory_space<vmem>>, %arg3: memref<8x128xf32, #tpu.memory_space<vmem>>) attributes {dimension_semantics = [], scalar_prefetch = 0 : i64, scratch_operands = 0 : i64, tpu.core_type = #tpu.core_type<tc>} {
    %c0 = arith.constant 0 : index
    %c0_0 = arith.constant 0 : index
    %0 = vector.load %arg0[%c0, %c0_0] : memref<8x128xf32, #tpu.memory_space<vmem>>, vector<8x128xf32>
    %c0_1 = arith.constant 0 : index
    %c0_2 = arith.constant 0 : index
    %1 = vector.load %arg1[%c0_1, %c0_2] : memref<128x128xf32, #tpu.memory_space<vmem>>, vector<128x128xf32>
    %cst = arith.constant dense<0.000000e+00> : vector<8x128xf32>
    %2 = tpu.matmul %0, %1, %cst {dimension_numbers = #tpu.dot_dimension_numbers<[1], [0], [0], [1], [0, 0, 1, 1], [], []>} : vector<8x128xf32>, vector<128x128xf32>, vector<8x128xf32> -> vector<8x128xf32>
    %c0_3 = arith.constant 0 : index
    %c0_4 = arith.constant 0 : index
    %3 = vector.load %arg2[%c0_3, %c0_4] : memref<1x128xf32, #tpu.memory_space<vmem>>, vector<1x128xf32>
    %4 = vector.broadcast %3 : vector<1x128xf32> to vector<8x128xf32>
    %5 = arith.addf %2, %4 : vector<8x128xf32>
    %c0_5 = arith.constant 0 : index
    %c0_6 = arith.constant 0 : index
    %6 = vector.load %arg3[%c0_5, %c0_6] : memref<8x128xf32, #tpu.memory_space<vmem>>, vector<8x128xf32>
    tpu.vector_store %arg3[%c0_5, %c0_6], %5 {strides = array<i32>} : memref<8x128xf32, #tpu.memory_space<vmem>>, vector<8x128xf32>,
    return
  }
}

</mosaic_0001>

<bundles_post_ra>
// kernel: extractor_forward.1
= control target key start
LH: loop header
LB: loop body
LE: loop exit
PB: predicated region body
PF: predicated region fallthrough
CT: control target
= control target key end

     0   :  { %8 = vsyncpa [#allocation3], 0  ;;  %s183_s0 = inlined_call_operand.vmem [shape: f32[8,128], index: 0, kind: input, shape index: {}]   ;;  %s184_s1 = inlined_call_operand.hbm [shape: f32[128,128], index: 1, kind: input, shape index: {}]   ;;  %s185_s2 = inlined_call_operand.vmem [shape: f32[1,128], index: 2, kind: input, shape index: {}]   ;;  %s186_s3 = inlined_call_operand.hbm [shape: f32[8,128], index: 3, kind: output, shape index: {}]  }
   0x1   :  { %9 = vsyncpa [#allocation4], 0  ;;  %s16_s14 = sshll.u32 %s184_s1, 4  ;;  %s147_s15 = smov [#allocation2]   ;;  %s17_s14 = int_to_ptr.hbm [resolvable:$true] %s16_s14 }
   0x2   :  { %s18_s16 = sshll.u32 %s147_s15, 4  ;;  %s148_s17 = smov 128   ;;  %s19_s16 = int_to_ptr.vmem [resolvable:$true] %s18_s16 }
   0x3   :  { %s149_s18 = smov 8  }
   0x4   :  { %24 = dma.hbm_to_vmem [thread:$0]  %s17_s14, 2048, %s19_s16, [#allocation3], %s148_s17, %s148_s17, %s149_s18  }
   0x5   :  { %143 = dma.done.wait [#allocation3], 2048  }
   0x6   :  { %144 = vsyncadd [#allocation3], 4294965248  ;;  %v47_v0 = vld [vmem:[#allocation2 + $0x78] sm:$0xff]  ;;  %v46_v1 = vld [vmem:[#allocation2 + $0x70] sm:$0xff]  ;;  %s150_s22 = smov [#allocation5]   ;;  %s80_s26 = sshll.u32 %s186_s3, 4  ;;  %s81_s26 = int_to_ptr.hbm [resolvable:$true] %s80_s26 }
   0x7   :  { %52 = vmatpush.msra.mxu0 %v47_v0  ;;  %v45_v2 = vld [vmem:[#allocation2 + $0x68] sm:$0xff]  ;;  %v44_v3 = vld [vmem:[#allocation2 + $0x60] sm:$0xff]  ;;  %v43_v4 = vld [vmem:[#allocation2 + $0x58] sm:$0xff]  ;;  %s78_s23 = sshll.u32 %s150_s22, 4  ;;  %s79_s23 = int_to_ptr.vmem [resolvable:$true] %s78_s23 }
   0x8   :  { %v42_v5 = vld [vmem:[#allocation2 + $0x50] sm:$0xff]  ;;  %v41_v6 = vld [vmem:[#allocation2 + $0x48] sm:$0xff]  ;;  %v40_v7 = vld [vmem:[#allocation2 + $0x40] sm:$0xff] }
   0x9   :  { %53 = vmatpush.msra.mxu0 %v46_v1  ;;  %v39_v8 = vld [vmem:[#allocation2 + $0x38] sm:$0xff]  ;;  %v38_v9 = vld [vmem:[#allocation2 + $0x30] sm:$0xff]  ;;  %v37_v10 = vld [vmem:[#allocation2 + $0x28] sm:$0xff] }
   0xa   :  { %v36_v11 = vld [vmem:[#allocation2 + $0x20] sm:$0xff]  ;;  %v35_v12 = vld [vmem:[#allocation2 + $0x18] sm:$0xff]  ;;  %v34_v13 = vld [vmem:[#allocation2 + $0x10] sm:$0xff] }
   0xb   :  { %54 = vmatpush.msra.mxu0 %v45_v2  ;;  %v33_v14 = vld [vmem:[#allocation2 + $0x8] sm:$0xff]  ;;  %v32_v15 = vld [vmem:[#allocation2] sm:$0xff] }
   0xc   :  { %v31_v16 = vld [vmem:[%s183_s0] sm:$0xff] }
   0xd   :  { %55 = vmatpush.msra.mxu0 %v44_v3  ;;  %v94_v17 = vld [vmem:[%s185_s2] ss:$0 sm:$0xff] }
   0xf   :  { %56 = vmatpush.msra.mxu0 %v43_v4 }
  0x11   :  { %57 = vmatpush.msra.mxu0 %v42_v5 }
  0x13   :  { %58 = vmatpush.msra.mxu0 %v41_v6 }
  0x15   :  { %59 = vmatpush.msra.mxu0 %v40_v7 }
  0x17   :  { %60 = vmatpush.msra.mxu0 %v39_v8 }
  0x19   :  { %61 = vmatpush.msra.mxu0 %v38_v9 }
  0x1b   :  { %62 = vmatpush.msra.mxu0 %v37_v10 }
  0x1d   :  { %63 = vmatpush.msra.mxu0 %v36_v11 }
  0x1f   :  { %64 = vmatpush.msra.mxu0 %v35_v12 }
  0x21   :  { %65 = vmatpush.msra.mxu0 %v34_v13 }
  0x23   :  { %66 = vmatpush.msra.mxu0 %v33_v14 }
  0x25   :  { %67 = vmatpush.msra.mxu0 %v32_v15 }
  0x26   :  { %68 = vmatmul.f32.vlgmr.msra.gmra.mxu0 %v31_v16 }
  0xa3   :  { %v69_v18 = vpop.f32.mrf.mxu0 }
  0xa4   :  { %v70_v19 = vadd.f32 %v94_v17, %v69_v18 }
  0xa6   :  { %72 = vst [vmem:[#allocation5] sm:$0xff] %v70_v19 }
  0xa7   :  { %83 = dma.vmem_to_hbm [thread:$0]  %s79_s23, 128, %s81_s26, [#allocation4]  }
  0xa8   :  { %145 = dma.done.wait [#allocation4], 128  }
  0xa9   :  { %146 = vsyncadd [#allocation4], 4294967168 }
  0xaa   :  { %88 = vsyncpa [#allocation3], 1 }
  0xab   :  { %89 = vsyncpa [#allocation4], 1 }

</bundles_post_ra>
